<compile_context>
chip_gen: v7x
topology: tpu7x:2x2x1
jax: 0.10.0
libtpu: 0.0.40
codegen_flags: <defaults>
</compile_context>

<pallas_src>
import jax
import jax.numpy as jnp
from jax.experimental import pallas as pl
from jax.experimental.pallas import tpu as pltpu


def _round_up(x: int, m: int) -> int:
    return ((x + m - 1) // m) * m


def mlp_layer_kernel(x_ref, w_ref, b_ref, o_ref):
    # x_ref: (TB, Hin_p) compute dtype    w_ref: (Hin_p, TN) compute dtype
    # b_ref: (1, TN) f32                  o_ref: (TB, TN) out dtype
    acc = jnp.dot(x_ref[...], w_ref[...], preferred_element_type=jnp.float32)  # MXU
    acc = acc + b_ref[...]                            # f32 bias broadcast (VPU)
    o_ref[...] = jnp.tanh(acc).astype(o_ref.dtype)    # EUP tanh, single cast at store


def prepare_mlp_params(weight, bias, *, compute_dtype=jnp.bfloat16):
    """One-time parameter prep (call at init, NOT per forward).

    weight: (H_out, H_in) as in nn.Linear; bias: (H_out,).
    Returns (w_t_padded, bias_2d_f32, H_out) where
      w_t_padded: (Hin_p, Hout_p) in compute_dtype, feature dims padded to 128,
      bias_2d_f32: (1, Hout_p) in f32 (epilogue stays f32).
    """
    H_out, H_in = weight.shape
    assert bias.shape == (H_out,)
    Hin_p = max(_round_up(H_in, 128), 128)
    Hout_p = max(_round_up(H_out, 128), 128)
    w_t = weight.T  # (H_in, H_out)
    if (Hin_p, Hout_p) != (H_in, H_out):
        w_t = jnp.pad(w_t, ((0, Hin_p - H_in), (0, Hout_p - H_out)))
        bias = jnp.pad(bias, (0, Hout_p - H_out))
    w_t = w_t.astype(compute_dtype)
    b2 = bias.reshape(1, Hout_p).astype(jnp.float32)
    return w_t, b2, H_out


def _choose_tile_n(Hout_p: int, Hin_p: int, cbytes: int, budget_bytes: int = 16 << 20) -> int:
    """Largest N tile (multiple of 128, dividing Hout_p) whose double-buffered
    W block fits the budget. Collapses to Hout_p (fully-resident W) for BERT-size H."""
    if 2 * Hin_p * Hout_p * cbytes <= budget_bytes:
        return Hout_p
    t = Hout_p
    while t > 128:
        t //= 2
        if t % 128 == 0 and Hout_p % t == 0 and 2 * Hin_p * t * cbytes <= budget_bytes:
            return t
    return 128  # Hout_p is always a multiple of 128


def mlp_layer(features, w_t_padded, bias_2d, *, tile_b=256, out_dtype=None):
    """features: (B, H_in); w_t_padded: (Hin_p, Hout_p); bias_2d: (1, Hout_p)."""
    B, H_in = features.shape
    Hin_p, Hout_p = w_t_padded.shape
    assert bias_2d.shape == (1, Hout_p)
    assert Hin_p % 128 == 0 and Hout_p % 128 == 0 and Hin_p >= H_in
    if out_dtype is None:
        out_dtype = features.dtype
    compute_dtype = w_t_padded.dtype
    cbytes = jnp.dtype(compute_dtype).itemsize
    obytes = jnp.dtype(out_dtype).itemsize

    # Fixed batch tiles (sublane rule: multiple of 8; 128-multiples at real sizes).
    tile_b = _round_up(max(8, min(int(tile_b), _round_up(B, 8))), 8)
    B_pad = _round_up(B, tile_b)

    # Output-feature tiles: single tile (resident W) unless W is too large.
    tile_n = _choose_tile_n(Hout_p, Hin_p, cbytes)
    num_n = Hout_p // tile_n
    num_b = B_pad // tile_b
    # TODO(synk): for gigantic H_in (>~8K) also tile the contraction dim with a
    # f32 VMEM accumulator instead of keeping the full Hin_p slab per W block.

    x = features
    if B_pad != B or Hin_p != H_in:
        x = jnp.pad(x, ((0, B_pad - B), (0, Hin_p - H_in)))
    x = x.astype(compute_dtype)

    cost = pl.CostEstimate(
        flops=2 * B_pad * Hin_p * Hout_p,
        transcendentals=B_pad * Hout_p,
        bytes_accessed=(B_pad * Hin_p * cbytes          # x (re-read num_n times is ignored; hint only)
                        + Hin_p * Hout_p * cbytes       # W^T
                        + Hout_p * 4                    # bias
                        + B_pad * Hout_p * obytes),     # y
    )

    # VMEM working set: double-buffered x / W / bias / y tiles.
    vmem_est = 2 * (tile_b * Hin_p * cbytes
                    + Hin_p * tile_n * cbytes
                    + tile_n * 4
                    + tile_b * tile_n * obytes)
    cp = dict(dimension_semantics=("parallel", "parallel"))
    if vmem_est > (30 << 20):
        cp["vmem_limit_bytes"] = min(int(vmem_est * 1.25) + (2 << 20), 100 << 20)

    # Grid ordering (n outer, b inner): W block index is constant across the
    # inner batch sweep, so the pipeline does not re-fetch it per step.
    out = pl.pallas_call(
        mlp_layer_kernel,
        out_shape=jax.ShapeDtypeStruct((B_pad, Hout_p), out_dtype),
        grid_spec=pl.GridSpec(
            grid=(num_n, num_b),
            in_specs=[
                pl.BlockSpec((tile_b, Hin_p), lambda n, b: (b, 0)),   # x tile
                pl.BlockSpec((Hin_p, tile_n), lambda n, b: (0, n)),   # W^T column block
                pl.BlockSpec((1, tile_n), lambda n, b: (0, n)),       # bias (f32)
            ],
            out_specs=pl.BlockSpec((tile_b, tile_n), lambda n, b: (b, n)),
        ),
        compiler_params=pltpu.CompilerParams(**cp),
        cost_estimate=cost,
    )(x, w_t_padded, bias_2d)

    if B_pad != B or Hout_p != w_t_padded.shape[1] or Hout_p != out.shape[1] or out.shape != (B, w_t_padded.shape[1]):
        out = out[:B, :bias_2d.shape[1]]
    # Slice off feature padding down to the true H_out.
    return out[:, : (bias_2d.shape[1] if bias_2d.shape[1] < out.shape[1] else out.shape[1])][:B, :]


def mlp_layer_forward(features, weight, bias, *, compute_dtype=jnp.bfloat16, tile_b=256):
    """Convenience wrapper mirroring MLPLayer.forward: tanh(features @ W^T + b)."""
    w_t, b2, H_out = prepare_mlp_params(weight, bias, compute_dtype=compute_dtype)
    out = mlp_layer(features, w_t, b2, tile_b=tile_b)
    return out[:, :H_out]


if __name__ == "__main__":
    key = jax.random.PRNGKey(0)
    k_x, k_w, k_b = jax.random.split(key, 3)

    B, H = 8, 32                         # small test: batch=8, hidden_size=32
    features = jax.random.normal(k_x, (B, H), dtype=jnp.float32)
    # Deterministic synthetic nn.Linear(H, H) parameters.
    weight = jax.random.normal(k_w, (H, H), dtype=jnp.float32) * (1.0 / jnp.sqrt(H))
    bias = jax.random.normal(k_b, (H,), dtype=jnp.float32) * 0.01

    ref = jnp.tanh(features @ weight.T + bias)

    # Strict numerical check: f32 matmul path.
    out32 = jax.block_until_ready(
        mlp_layer_forward(features, weight, bias, compute_dtype=jnp.float32))
    assert out32.shape == (B, H)
    assert jnp.allclose(out32, ref, atol=1e-5, rtol=1e-5)

    # Production path: bf16 MXU operands, f32 accumulate + f32 bias/tanh epilogue.
    outbf = jax.block_until_ready(
        mlp_layer_forward(features, weight, bias, compute_dtype=jnp.bfloat16))
    assert outbf.shape == (B, H)
    assert jnp.allclose(outbf, ref, atol=7.5e-2, rtol=7.5e-2)

    print("KERNEL_OK")
</pallas_src>

<mosaic_0001>
module attributes {stable_mosaic.version = 11 : i64} {
  func.func @mlp_layer_kernel(%arg0: i32, %arg1: i32, %arg2: memref<8x128xf32, #tpu.memory_space<vmem>>, %arg3: memref<128x128xf32, #tpu.memory_space<vmem>>, %arg4: memref<1x128xf32, #tpu.memory_space<vmem>>, %arg5: memref<8x128xf32, #tpu.memory_space<vmem>>) attributes {dimension_semantics = [#tpu.dimension_semantics<parallel>, #tpu.dimension_semantics<parallel>], iteration_bounds = array<i64: 1, 1>, scalar_prefetch = 0 : i64, scratch_operands = 0 : i64, tpu.core_type = #tpu.core_type<tc>, window_params = [{transform_indices = @transform_0, window_bounds = array<i64: 8, 128>}, {transform_indices = @transform_1, window_bounds = array<i64: 128, 128>}, {transform_indices = @transform_2, window_bounds = array<i64: 1, 128>}, {transform_indices = @transform_3, window_bounds = array<i64: 8, 128>}]} {
    %c0 = arith.constant 0 : index
    %c0_0 = arith.constant 0 : index
    %0 = vector.load %arg2[%c0, %c0_0] : memref<8x128xf32, #tpu.memory_space<vmem>>, vector<8x128xf32>
    %c0_1 = arith.constant 0 : index
    %c0_2 = arith.constant 0 : index
    %1 = vector.load %arg3[%c0_1, %c0_2] : memref<128x128xf32, #tpu.memory_space<vmem>>, vector<128x128xf32>
    %cst = arith.constant dense<0.000000e+00> : vector<8x128xf32>
    %2 = tpu.matmul %0, %1, %cst {dimension_numbers = #tpu.dot_dimension_numbers<[1], [0], [0], [1], [0, 0, 1, 1], [], []>} : vector<8x128xf32>, vector<128x128xf32>, vector<8x128xf32> -> vector<8x128xf32>
    %c0_3 = arith.constant 0 : index
    %c0_4 = arith.constant 0 : index
    %3 = vector.load %arg4[%c0_3, %c0_4] : memref<1x128xf32, #tpu.memory_space<vmem>>, vector<1x128xf32>
    %4 = vector.broadcast %3 : vector<1x128xf32> to vector<8x128xf32>
    %5 = arith.addf %2, %4 : vector<8x128xf32>
    %6 = math.tanh %5 : vector<8x128xf32>
    %c0_5 = arith.constant 0 : index
    %c0_6 = arith.constant 0 : index
    %7 = vector.load %arg5[%c0_5, %c0_6] : memref<8x128xf32, #tpu.memory_space<vmem>>, vector<8x128xf32>
    tpu.vector_store %arg5[%c0_5, %c0_6], %6 {strides = array<i32>} : memref<8x128xf32, #tpu.memory_space<vmem>>, vector<8x128xf32>,
    return
  }
  func.func @transform_0(%arg0: i32, %arg1: i32) -> (i32, i32) {
    %c0_i32 = arith.constant 0 : i32
    %c0_i32_0 = arith.constant 0 : i32
    return %arg1, %c0_i32 : i32, i32
  }
  func.func @transform_1(%arg0: i32, %arg1: i32) -> (i32, i32) {
    %c0_i32 = arith.constant 0 : i32
    %c0_i32_0 = arith.constant 0 : i32
    return %c0_i32, %arg0 : i32, i32
  }
  func.func @transform_2(%arg0: i32, %arg1: i32) -> (i32, i32) {
    %c0_i32 = arith.constant 0 : i32
    %c0_i32_0 = arith.constant 0 : i32
    return %c0_i32, %arg0 : i32, i32
  }
  func.func @transform_3(%arg0: i32, %arg1: i32) -> (i32, i32) {
    %c0_i32 = arith.constant 0 : i32
    return %arg1, %arg0 : i32, i32
  }
}

</mosaic_0001>

<bundles_post_ra>
// kernel: tpu_custom_call.1
= control target key start
LH: loop header
LB: loop body
LE: loop exit
PB: predicated region body
PF: predicated region fallthrough
CT: control target
= control target key end

     0   :  { %8 = vsyncpa [#allocation3], 0  ;;  %s386_s0 = inlined_call_operand.hbm [shape: f32[8,128], index: 0, kind: input, shape index: {}]   ;;  %s387_s1 = inlined_call_operand.hbm [shape: f32[128,128], index: 1, kind: input, shape index: {}]   ;;  %s388_s2 = inlined_call_operand.vmem [shape: f32[1,128], index: 2, kind: input, shape index: {}]   ;;  %s389_s3 = inlined_call_operand.hbm [shape: f32[8,128], index: 3, kind: output, shape index: {}]  }
   0x1   :  { %9 = vsyncpa [#allocation6], 0 }
   0x2   :  { %10 = vsyncpa [#allocation4], 0  ;;  %s312_s12 = smov [#allocation2]   ;;  %s313_s14 = smov [#allocation5]  }
   0x3   :  { %s17_s13 = sshll.u32 %s312_s12, 4  ;;  %s26_s15 = sshll.u32 %s313_s14, 4  ;;  %s18_s13 = int_to_ptr.vmem [resolvable:$true] %s17_s13  ;;  %s340_s15 = int_to_ptr.vmem [resolvable:$true] %s26_s15 }
   0x4   :  { %s240_s18 = scalar_lea.hbm %s386_s0, 128 }
   0x5   :  { %p241_p0 = scmp.ne.s32.totalorder %s386_s0, %s240_s18  ;;  %p244_p1 = scmp.lt.u32.totalorder %s240_s18, %s386_s0 }
   0x7   :  { %p246_p2 = pnand %p244_p1, %p241_p0 }
   0x9   :  { %249 = shalt.err (!%p246_p2)
}
   0xa   :  { %s250_s23 = scalar_lea.vmem %s18_s13, 128  ;;  %p255_p4 = scmp.lt.s32.totalorder %s18_s13, %s18_s13 }
   0xb   :  { %p251_p3 = scmp.ne.s32.totalorder %s18_s13, %s250_s23  ;;  %p256_p5 = scmp.lt.s32.totalorder %s250_s23, %s250_s23 }
   0xd   :  { %p257_p6 = por %p256_p5, %p255_p4 }
   0xf   :  { %p258_p7 = pnand %p257_p6, %p251_p3 }
  0x11   :  { %261 = shalt.err (!%p258_p7)
}
  0x12   :  { %20 = dma.hbm_to_vmem [thread:$0]  %s386_s0, 128, %s18_s13, [#allocation3]  }
  0x13   :  { %s262_s28 = scalar_lea.hbm %s387_s1, 2048 }
  0x14   :  { %p263_p8 = scmp.ne.s32.totalorder %s387_s1, %s262_s28  ;;  %p266_p9 = scmp.lt.u32.totalorder %s262_s28, %s387_s1 }
  0x16   :  { %p268_p10 = pnand %p266_p9, %p263_p8 }
  0x18   :  { %271 = shalt.err (!%p268_p10)
}
  0x19   :  { %s272_s6 = scalar_lea.vmem %s340_s15, 2048  ;;  %p277_p12 = scmp.lt.s32.totalorder %s340_s15, %s340_s15 }
  0x1a   :  { %p273_p11 = scmp.ne.s32.totalorder %s340_s15, %s272_s6  ;;  %p278_p13 = scmp.lt.s32.totalorder %s272_s6, %s272_s6 }
  0x1c   :  { %p279_p0 = por %p278_p13, %p277_p12 }
  0x1e   :  { %p280_p1 = pnand %p279_p0, %p273_p11 }
  0x20   :  { %283 = shalt.err (!%p280_p1)
}
  0x21   :  { %s314_s0 = smov 128   ;;  %s315_s7 = smov 8  }
  0x22   :  { %32 = dma.hbm_to_vmem [thread:$0]  %s387_s1, 2048, %s340_s15, [#allocation6], %s314_s0, %s314_s0, %s315_s7  }
  0x23   :  { %306 = dma.done.wait [#allocation3], 128  }
  0x24   :  { %307 = vsyncadd [#allocation3], 4294967168 }
  0x25   :  { %308 = dma.done.wait [#allocation6], 2048  }
  0x26   :  { %309 = vsyncadd [#allocation6], 4294965248  ;;  %v316_v0 = vmov 0.0|0.0   ;;  %vm317_vm0 = vmmov 0   ;;  %v318_v1 = vmov 0.0   ;;  %v42_v2 = vld [vmem:[#allocation5] sm:$0xff] }
  0x27   :  { %206 = vmatprep.subr.bf16.mxu0 %v316_v0  ;;  %203 = vmatprep.mubr.msk.f32.mxu0 %vm317_vm0, %v318_v1  ;;  %v43_v3 = vld [vmem:[#allocation5 + $0x8] sm:$0xff]  ;;  %v44_v4 = vld [vmem:[#allocation5 + $0x10] sm:$0xff]  ;;  %v45_v6 = vld [vmem:[#allocation5 + $0x18] sm:$0xff]  ;;  %s319_s11 = smov [#allocation7]  }
  0x28   :  { %v207_v5 = vpack.c.bf16 %v43_v3, %v42_v2  ;;  %v210_v7 = vpack.c.bf16 %v45_v6, %v44_v4  ;;  %v46_v8 = vld [vmem:[#allocation5 + $0x20] sm:$0xff]  ;;  %v47_v9 = vld [vmem:[#allocation5 + $0x28] sm:$0xff]  ;;  %v48_v11 = vld [vmem:[#allocation5 + $0x30] sm:$0xff]  ;;  %s143_s12 = sshll.u32 %s319_s11, 4  ;;  %s144_s12 = int_to_ptr.vmem [resolvable:$true] %s143_s12 }
  0x29   :  { %v213_v10 = vpack.c.bf16 %v47_v9, %v46_v8  ;;  %v49_v12 = vld [vmem:[#allocation5 + $0x38] sm:$0xff]  ;;  %v50_v14 = vld [vmem:[#allocation5 + $0x40] sm:$0xff]  ;;  %v51_v15 = vld [vmem:[#allocation5 + $0x48] sm:$0xff]  ;;  %s284_s13 = scalar_lea.vmem %s144_s12, 128  ;;  %p289_p3 = scmp.lt.s32.totalorder %s144_s12, %s144_s12 }
  0x2a   :  { %208 = vmatpush3.bf16.msra.mxu0 %v207_v5  ;;  %v216_v13 = vpack.c.bf16 %v49_v12, %v48_v11  ;;  %v219_v16 = vpack.c.bf16 %v51_v15, %v50_v14  ;;  %v52_v17 = vld [vmem:[#allocation5 + $0x50] sm:$0xff]  ;;  %v53_v18 = vld [vmem:[#allocation5 + $0x58] sm:$0xff]  ;;  %v54_v20 = vld [vmem:[#allocation5 + $0x60] sm:$0xff]  ;;  %p285_p2 = scmp.ne.s32.totalorder %s144_s12, %s284_s13  ;;  %p290_p4 = scmp.lt.s32.totalorder %s284_s13, %s284_s13 }
  0x2b   :  { %209 = vmatprep.subr.bf16.mxu0 %v316_v0  ;;  %v222_v19 = vpack.c.bf16 %v53_v18, %v52_v17  ;;  %v55_v21 = vld [vmem:[#allocation5 + $0x68] sm:$0xff]  ;;  %v56_v23 = vld [vmem:[#allocation5 + $0x70] sm:$0xff]  ;;  %v57_v24 = vld [vmem:[#allocation5 + $0x78] sm:$0xff] }
  0x2c   :  { %v225_v22 = vpack.c.bf16 %v55_v21, %v54_v20  ;;  %v228_v25 = vpack.c.bf16 %v57_v24, %v56_v23  ;;  %v41_v26 = vld [vmem:[#allocation2] sm:$0xff]  ;;  %p291_p5 = por %p290_p4, %p289_p3 }
  0x2d   :  { %v153_v27 = vld [vmem:[%s388_s2] ss:$0 sm:$0xff] }
  0x2e   :  { %211 = vmatpush3.bf16.msra.mxu0 %v210_v7  ;;  %p292_p6 = pnand %p291_p5, %p285_p2 }
  0x2f   :  { %212 = vmatprep.subr.bf16.mxu0 %v316_v0 }
  0x32   :  { %214 = vmatpush3.bf16.msra.mxu0 %v213_v10 }
  0x33   :  { %215 = vmatprep.subr.bf16.mxu0 %v316_v0 }
  0x36   :  { %217 = vmatpush3.bf16.msra.mxu0 %v216_v13 }
  0x37   :  { %218 = vmatprep.subr.bf16.mxu0 %v316_v0 }
  0x3a   :  { %220 = vmatpush3.bf16.msra.mxu0 %v219_v16 }
  0x3b   :  { %221 = vmatprep.subr.bf16.mxu0 %v316_v0 }
  0x3e   :  { %223 = vmatpush3.bf16.msra.mxu0 %v222_v19 }
  0x3f   :  { %224 = vmatprep.subr.bf16.mxu0 %v316_v0 }
  0x42   :  { %226 = vmatpush3.bf16.msra.mxu0 %v225_v22 }
  0x43   :  { %227 = vmatprep.subr.bf16.mxu0 %v316_v0 }
  0x46   :  { %229 = vmatpush3.bf16.msra.mxu0 %v228_v25 }
  0x49   :  { %204 = vmatmul.mubr.f32.vlgmr.msra.gmra.mrb[0].mxu0 %v41_v26 }
 0x11c   :  { %v131_v28 = vpop.f32.mrb[0].mxu0 }
 0x11d   :  { %v132_v29 = vadd.f32 %v153_v27, %v131_v28  ;;  %v205_v30 = vpop.f32.mrb[1].mxu0 }
 0x11f   :  { %238 = vtanh.f32 %v132_v29 }
 0x129   :  { %v239_v31 = vpop.eup %238 }
 0x12a   :  { %136 = vst [vmem:[#allocation7] sm:$0xff] %v239_v31 }
 0x12b   :  { %295 = shalt.err (!%p292_p6)
}
 0x12c   :  { %s296_s2 = scalar_lea.hbm %s389_s3, 128 }
 0x12d   :  { %p297_p7 = scmp.ne.s32.totalorder %s389_s3, %s296_s2  ;;  %p300_p8 = scmp.lt.u32.totalorder %s296_s2, %s389_s3 }
 0x12f   :  { %p302_p9 = pnand %p300_p8, %p297_p7 }
 0x131   :  { %305 = shalt.err (!%p302_p9)
}
 0x132   :  { %146 = dma.vmem_to_hbm [thread:$0]  %s144_s12, 128, %s389_s3, [#allocation4]  }
 0x133   :  { %310 = dma.done.wait [#allocation4], 128  }
 0x134   :  { %311 = vsyncadd [#allocation4], 4294967168 }
 0x135   :  { %150 = vsyncpa [#allocation3], 1 }
 0x136   :  { %151 = vsyncpa [#allocation6], 1 }
 0x137   :  { %152 = vsyncpa [#allocation4], 1 }

</bundles_post_ra>
